<compile_context>
chip_gen: v6e
topology: v6e:2x2x1
jax: 0.10.0
libtpu: 0.0.40
codegen_flags: <defaults>
</compile_context>

<pallas_src>
import functools

import jax
import jax.numpy as jnp
import numpy as np
from jax.experimental import pallas as pl
from jax.experimental.pallas import tpu as pltpu

_LANE = 128
_VMEM_BLOCK_BUDGET = 20 << 20     # target for double-buffered per-block working set
_VMEM_LIMIT_BYTES = 32 << 20      # scoped VMEM request (safe on v5e/v6e/v7x)
_TINY_FALLBACK_BYTES = 256 << 10  # below this, let XLA fuse it instead


def _round_up(n, m):
    return (n + m - 1) // m * m


# ----------------------------------------------------------------------------
# Kernel: one wide multiply + lane-aligned head accumulation for one row block.
# ----------------------------------------------------------------------------
def _merger_kernel(x_ref, sw_ref, o_ref, *, head, fea_pad):
    """x_ref: (rows, head*fea_pad) slab; sw_ref: (1, head*fea_pad) f32; o_ref: (rows, fea_pad)."""
    # Single lane-dense VPU multiply (broadcast of sw over the row/sublane axis).
    y = x_ref[...].astype(jnp.float32) * sw_ref[...]
    # Accumulate the `head` lane-aligned fea_pad-wide slices (static unroll).
    acc = y[:, 0:fea_pad]
    for h in range(1, head):
        acc = acc + y[:, h * fea_pad:(h + 1) * fea_pad]
    o_ref[...] = acc.astype(o_ref.dtype)


# ----------------------------------------------------------------------------
# Row-block sizing: VMEM budget + v7x dual-core split + sublane granule.
# ----------------------------------------------------------------------------
def _pick_rows(bs, head, fea_pad, itemsize, block_rows):
    granule = 16 if itemsize < 4 else 8
    # Double-buffered input slab + output block per grid step.
    per_row_bytes = 2 * fea_pad * itemsize * (head + 1)
    budget_rows = max(granule,
                      (_VMEM_BLOCK_BUDGET // per_row_bytes) // granule * granule)
    cap = 1024 if block_rows is None else block_rows
    cap = max(granule, (cap // granule) * granule)
    rows = min(cap, budget_rows)
    # Guarantee >= 2 blocks for medium/large batches so both v7x TCs get work.
    if bs >= 32:
        rows = min(rows, _round_up(-(-bs // 2), granule))
    if rows >= bs:
        return bs  # single full block (full-dim block shape is always legal)
    return rows
    # TODO(synk): if head*fea_pad is ever so large that even `granule` rows
    # exceed the VMEM budget, add a fea grid axis (3-D BlockSpec) instead.


# ----------------------------------------------------------------------------
# Wrapper
# ----------------------------------------------------------------------------
def merger(x, weight, *, block_rows=None, min_kernel_bytes=_TINY_FALLBACK_BYTES):
    """Merger forward.

    x:      [bs, head, fea]        (f32 or bf16)
    weight: [1, head, fea] or [head, fea] (f32 Parameter layout accepted)
    returns [bs, fea] in x.dtype
    """
    bs, head, fea = x.shape
    if head == 1:
        # torch.squeeze(x, dim=1) — trivial view, no kernel needed.
        return x[:, 0, :]

    # Softmax of the tiny parameter over the head axis — done once, in f32,
    # outside the grid (hoisted out of the per-step kernel body).
    sw = jax.nn.softmax(weight.reshape(head, fea).astype(jnp.float32), axis=0)

    # Tiny-shape fallback: launch/pipeline overhead dwarfs the work.
    if bs * head * fea * x.dtype.itemsize < min_kernel_bytes:
        out = jnp.sum(sw[None, :, :] * x.astype(jnp.float32), axis=1)
        return out.astype(x.dtype)

    # Lane-dense padding of the feature axis to a multiple of 128.
    fea_pad = _round_up(fea, _LANE)
    if fea_pad != fea:
        # TODO(synk): ideally the upstream producer emits lane-padded activations
        # so this extra pad copy disappears.
        x = jnp.pad(x, ((0, 0), (0, 0), (0, fea_pad - fea)))
        sw = jnp.pad(sw, ((0, 0), (0, fea_pad - fea)))

    x2d = x.reshape(bs, head * fea_pad)          # adjacent-dim merge: free reshape
    sw_flat = sw.reshape(1, head * fea_pad)      # flattened head-major, f32

    itemsize = x.dtype.itemsize
    rows = _pick_rows(bs, head, fea_pad, itemsize, block_rows)
    grid = (pl.cdiv(bs, rows),)

    kern = functools.partial(_merger_kernel, head=head, fea_pad=fea_pad)
    out_pad = pl.pallas_call(
        kern,
        out_shape=jax.ShapeDtypeStruct((bs, fea_pad), x.dtype),
        grid=grid,
        in_specs=[
            pl.BlockSpec((rows, head * fea_pad), lambda i: (i, 0)),
            pl.BlockSpec((1, head * fea_pad), lambda i: (0, 0)),
        ],
        out_specs=pl.BlockSpec((rows, fea_pad), lambda i: (i, 0)),
        compiler_params=pltpu.CompilerParams(
            dimension_semantics=("parallel",),
            vmem_limit_bytes=_VMEM_LIMIT_BYTES,
        ),
        cost_estimate=pl.CostEstimate(
            flops=2 * bs * head * fea,
            transcendentals=0,
            bytes_accessed=bs * fea * itemsize * (head + 1),
        ),
    )(x2d, sw_flat)

    return out_pad if fea_pad == fea else out_pad[:, :fea]


# ----------------------------------------------------------------------------
# Pure-JAX reference (same math as the PyTorch module)
# ----------------------------------------------------------------------------
def merger_ref(x, weight):
    bs, head, fea = x.shape
    if head == 1:
        return x[:, 0, :]
    sw = jax.nn.softmax(weight.reshape(head, fea).astype(jnp.float32), axis=0)
    return jnp.sum(sw[None, :, :] * x.astype(jnp.float32), axis=1).astype(x.dtype)


def _check(a, b, atol=1e-5, rtol=1e-5):
    np.testing.assert_allclose(
        np.asarray(a.astype(jnp.float32)), np.asarray(b.astype(jnp.float32)),
        rtol=rtol, atol=atol)


# ----------------------------------------------------------------------------
# Self-test
# ----------------------------------------------------------------------------
if __name__ == "__main__":
    key = jax.random.PRNGKey(0)
    k1, k2, k3, k4, k5, k6 = jax.random.split(key, 6)

    # (a) Module-faithful small shape (bs=16, head=4, fea=32) with the
    #     Parameter(...).fill_(1.0) init — exercises the tiny-shape fallback.
    bs, head, fea = 16, 4, 32
    x = jax.random.normal(k1, (bs, head, fea), jnp.float32)
    w_ones = jnp.ones((1, head, fea), jnp.float32)
    out_a = jax.block_until_ready(merger(x, w_ones))
    assert out_a.shape == (bs, fea), out_a.shape
    _check(out_a, merger_ref(x, w_ones))

    # (b) Kernel path, lane-dense fea=128, random ("trained") weight.
    #     bs=256 -> split into 2 row blocks (dual-TC friendly).
    bs2, fea2 = 256, 128
    x2 = jax.random.normal(k2, (bs2, head, fea2), jnp.float32)
    w2 = jax.random.normal(k3, (1, head, fea2), jnp.float32)
    out_b = jax.block_until_ready(merger(x2, w2))
    _check(out_b, merger_ref(x2, w2))

    # (c) Kernel path with fea not a multiple of 128 (fea=96 -> padded to 128).
    x3 = jax.random.normal(k4, (64, head, 96), jnp.float32)
    w3 = jax.random.normal(k5, (1, head, 96), jnp.float32)
    out_c = jax.block_until_ready(merger(x3, w3, min_kernel_bytes=0))
    assert out_c.shape == (64, 96), out_c.shape
    _check(out_c, merger_ref(x3, w3))

    # (d) Explicit multi-block grid (block_rows=64 -> 4 blocks).
    out_d = jax.block_until_ready(merger(x2, w2, block_rows=64))
    _check(out_d, merger_ref(x2, w2))

    # (e) bf16 activations end-to-end (f32 math inside the kernel).
    x5 = x2.astype(jnp.bfloat16)
    out_e = jax.block_until_ready(merger(x5, w2, min_kernel_bytes=0))
    assert out_e.dtype == jnp.bfloat16
    _check(out_e, merger_ref(x5, w2), atol=2e-2, rtol=2e-2)

    # (f) head == 1 branch: torch.squeeze(x, dim=1).
    x1 = jax.random.normal(k6, (bs, 1, fea), jnp.float32)
    out_f = jax.block_until_ready(merger(x1, jnp.ones((1, 1, fea), jnp.float32)))
    _check(out_f, x1[:, 0, :], atol=0, rtol=0)

    print("KERNEL_OK")
</pallas_src>

<mosaic_0001>
module attributes {stable_mosaic.version = 11 : i64} {
  func.func @_merger_kernel(%arg0: i32, %arg1: memref<128x512xf32, #tpu.memory_space<vmem>>, %arg2: memref<1x512xf32, #tpu.memory_space<vmem>>, %arg3: memref<128x128xf32, #tpu.memory_space<vmem>>) attributes {dimension_semantics = [#tpu.dimension_semantics<parallel>], iteration_bounds = array<i64: 2>, scalar_prefetch = 0 : i64, scratch_operands = 0 : i64, tpu.core_type = #tpu.core_type<tc>, window_params = [{transform_indices = @transform_0, window_bounds = array<i64: 128, 512>}, {pipeline_mode = #tpu.pipeline_mode<synchronous>, transform_indices = @transform_1, window_bounds = array<i64: 1, 512>}, {transform_indices = @transform_2, window_bounds = array<i64: 128, 128>}]} {
    %c0 = arith.constant 0 : index
    %c0_0 = arith.constant 0 : index
    %0 = vector.load %arg1[%c0, %c0_0] : memref<128x512xf32, #tpu.memory_space<vmem>>, vector<128x512xf32>
    %c0_1 = arith.constant 0 : index
    %c0_2 = arith.constant 0 : index
    %1 = vector.load %arg2[%c0_1, %c0_2] : memref<1x512xf32, #tpu.memory_space<vmem>>, vector<1x512xf32>
    %2 = vector.broadcast %1 : vector<1x512xf32> to vector<128x512xf32>
    %3 = arith.mulf %0, %2 : vector<128x512xf32>
    %4 = vector.extract_strided_slice %3 {offsets = [0, 0], sizes = [128, 128], strides = [1, 1]} : vector<128x512xf32> to vector<128x128xf32>
    %5 = vector.extract_strided_slice %3 {offsets = [0, 128], sizes = [128, 128], strides = [1, 1]} : vector<128x512xf32> to vector<128x128xf32>
    %6 = arith.addf %4, %5 : vector<128x128xf32>
    %7 = vector.extract_strided_slice %3 {offsets = [0, 256], sizes = [128, 128], strides = [1, 1]} : vector<128x512xf32> to vector<128x128xf32>
    %8 = arith.addf %6, %7 : vector<128x128xf32>
    %9 = vector.extract_strided_slice %3 {offsets = [0, 384], sizes = [128, 128], strides = [1, 1]} : vector<128x512xf32> to vector<128x128xf32>
    %10 = arith.addf %8, %9 : vector<128x128xf32>
    %c0_3 = arith.constant 0 : index
    %c0_4 = arith.constant 0 : index
    %11 = vector.load %arg3[%c0_3, %c0_4] : memref<128x128xf32, #tpu.memory_space<vmem>>, vector<128x128xf32>
    tpu.vector_store %arg3[%c0_3, %c0_4], %10 {strides = array<i32>} : memref<128x128xf32, #tpu.memory_space<vmem>>, vector<128x128xf32>,
    return
  }
  func.func @transform_0(%arg0: i32) -> (i32, i32) {
    %c0_i32 = arith.constant 0 : i32
    %c0_i32_0 = arith.constant 0 : i32
    return %arg0, %c0_i32 : i32, i32
  }
  func.func @transform_1(%arg0: i32) -> (i32, i32) {
    %c0_i32 = arith.constant 0 : i32
    %c0_i32_0 = arith.constant 0 : i32
    %c0_i32_1 = arith.constant 0 : i32
    return %c0_i32, %c0_i32_0 : i32, i32
  }
  func.func @transform_2(%arg0: i32) -> (i32, i32) {
    %c0_i32 = arith.constant 0 : i32
    %c0_i32_0 = arith.constant 0 : i32
    return %arg0, %c0_i32 : i32, i32
  }
}

</mosaic_0001>

<bundles_post_ra>
// kernel: tpu_custom_call.1
= control target key start
LH: loop header
LB: loop body
LE: loop exit
PB: predicated region body
PF: predicated region fallthrough
CT: control target
= control target key end

     0   :  { %7 = vsyncpa [#allocation3], 0  ;;  %s1057_s0 = inlined_call_operand.hbm [shape: f32[256,512], index: 0, kind: input, shape index: {}]   ;;  %s1058_s1 = inlined_call_operand.hbm [shape: f32[1,512], index: 1, kind: input, shape index: {}]   ;;  %s1059_s2 = inlined_call_operand.hbm [shape: f32[256,128], index: 2, kind: output, shape index: {}]  }
   0x1   :  { %9 = vsyncpa [#allocation3 + $0x1], 0 }
   0x2   :  { %10 = vsyncpa [#allocation6], 0 }
   0x3   :  { %11 = vsyncpa [#allocation4], 0 }
   0x4   :  { %13 = vsyncpa [#allocation4 + $0x1], 0  ;;  %s716_s9 = smov 0   ;;  %s718_s10 = smov 0  }
   0x5   :  { %s720_s11 = smov 0   ;;  %s722_s12 = smov 0  }
   0x6 LB: > { %s737_s13 = sadd.s32 4294967295, %s692_s12   ;;  %s489_s14 = sadd.s32 4294967294, %s692_s12   ;;  %s692_s12 = sphi %s722_s12, %s1082_s12   ;;  %s688_s11 = sphi %s720_s11, %s1081_s11   ;;  %s684_s10 = sphi %s718_s10, %s1080_s10   ;;  %s680_s9 = sphi %s716_s9, %s1079_s9  }
   0x7   : > { %s741_s15 = sadd.s32 1, %s692_s12   ;;  %s26_s16 = sadd.s32 1, %s688_s11 }
   0x8   : > { %s23_s17 = ssub.s32 %s692_s12, %s741_s15  ;;  %p33_p0 = scmp.ne.s32.totalorder %s688_s11, %s684_s10 }
   0x9   : > { %p24_p1 = scmp.eq.s32.totalorder %s23_s17, 0  ;;  %p34_p2 = scmp.eq.s32.totalorder %s692_s12, 0 }
   0xa   : > { %p39_p3 = scmp.ne.s32.totalorder %s684_s10, %s680_s9  ;;  %p1060_p4 = scmp.eq.s32.totalorder %s737_s13, 0 }
   0xb   : > { %s753_s18 = scalar_select %p24_p1, %s688_s11, %s26_s16  }
   0xc   : > { %p755_p5 = por %p34_p2, %p33_p0  ;;  %p761_p6 = por %p1060_p4, %p39_p3 }
   0xd   : > { %p84_p7 = scmp.eq.s32.totalorder %s737_s13, 1  ;;  %p90_p8 = scmp.eq.s32.totalorder %s489_s14, 1 }
   0xe   : > { %s1065_s20 = scalar_select %p761_p6, 1, 0 }
   0xf   : > { %p490_p9 = scmp.ge.s32.totalorder %s692_s12, 1  ;;  %p97_p10 = scmp.lt.s32.totalorder %s692_s12, 3 }
  0x10   : > { %p768_p11 = por %p84_p7, %p33_p0  ;;  %p772_p12 = por %p90_p8, %p39_p3 }
  0x11   : > { %p776_p13 = pnand %p490_p9, %p97_p10  ;;  %s694_s24 = smov [#allocation5]  }
  0x12   : > { %s1066_s21 = scalar_select %p768_p11, 1, 0 }
  0x13   : > { %s1067_s22 = scalar_select %p772_p12, 1, 0 }
  0x14   : > { %s1068_s23 = scalar_select %p776_p13, 1, 0 }
  0x15   : > { %p517_p2 = pneg %p776_p13  ;;  %s110_s25 = sshll.u32 %s694_s24, 4  ;;  %s111_s25 = int_to_ptr.vmem [resolvable:$true] %s110_s25 }
  0x16   : > { %p530_p4 = scmp.lt.s32.totalorder %s692_s12, 2  ;;  %p1069_p0 = scmp.eq.s32.totalorder %s737_s13, 0 }
  0x17   : > { %s121_s27 = sand.u32 1, %s688_s11   ;;  %s581_s30 = scalar_lea.vmem %s111_s25, 64 }
  0x18   : > { %p786_p7 = pnand %p517_p2, %p1069_p0  ;;  %p793_p3 = pnand %p530_p4, %p755_p5 }
  0x19   : > { %s493_s29 = sshll.u32 %s121_s27, 9  ;;  %p582_p9 = scmp.ne.s32.totalorder %s111_s25, %s581_s30 }
  0x1a   : > { %p572_p8 = pneg %p786_p7  ;;  %p589_p12 = scmp.lt.s32.totalorder %s111_s25, %s111_s25 }
  0x1b   : > { %p590_p11 = scmp.lt.s32.totalorder %s581_s30, %s581_s30 }
  0x1c   : > { %p584_p10 = pnand %p582_p9, %p572_p8 }
  0x1d   : > { %p591_p2 = por %p590_p11, %p589_p12 }
  0x1e   : > { %p585_p1 = pneg %p584_p10 }
  0x20   : > { %p592_p0 = pnand %p591_p2, %p585_p1 }
  0x22   : > { %595 = shalt.err (!%p592_p0)
}
  0x23   : > { %520 = dma.hbm_to_vmem [thread:$0]  (!%p786_p7), %s1058_s1, 64, %s111_s25, [#allocation6]  }
  0x24   : > { %s507_s5 = sshll.u32 %s692_s12, 13  ;;  %s125_s6 = scalar_lea.vmem [#allocation2], %s493_s29 }
  0x25   : > { %s133_s7 = sshll.u32 %s125_s6, 4  ;;  %s808_s16 = scalar_lea.hbm %s1057_s0, %s507_s5  ;;  %s810_s7 = int_to_ptr.vmem [resolvable:$true] %s133_s7 }
  0x26   : > { %s812_s17 = scalar_lea.sflag [#allocation3], %s121_s27  ;;  %s596_s19 = scalar_lea.hbm %s808_s16, 8192 }
  0x27   : > { %p597_p4 = scmp.ne.s32.totalorder %s808_s16, %s596_s19  ;;  %p598_p5 = pneg %p793_p3 }
  0x28   : > { %s601_s26 = scalar_lea.hbm %s1057_s0, 16384  ;;  %p602_p1 = scmp.lt.s32.totalorder %s808_s16, %s1057_s0 }
  0x29   : > { %p599_p11 = pnand %p598_p5, %p597_p4  ;;  %p603_p7 = scmp.lt.s32.totalorder %s601_s26, %s596_s19 }
  0x2b   : > { %p600_p12 = pneg %p599_p11  ;;  %p604_p8 = por %p603_p7, %p602_p1 }
  0x2d   : > { %p605_p9 = pnand %p604_p8, %p600_p12 }
  0x2f   : > { %608 = shalt.err (!%p605_p9)
}
  0x30   : > { %s609_s27 = scalar_lea.vmem %s810_s7, 8192  ;;  %s695_s3 = smov [#allocation2]  }
  0x31   : > { %p610_p10 = scmp.ne.s32.totalorder %s810_s7, %s609_s27  ;;  %s614_s4 = sshll.u32 %s695_s3, 4  ;;  %s615_s4 = int_to_ptr.vmem [resolvable:$false] %s614_s4 }
  0x32   : > { %s616_s5 = scalar_lea.vmem %s615_s4, 16384  ;;  %p617_p4 = scmp.lt.s32.totalorder %s810_s7, %s615_s4 }
  0x33   : > { %p612_p2 = pnand %p610_p10, %p598_p5  ;;  %p618_p11 = scmp.lt.s32.totalorder %s616_s5, %s609_s27 }
  0x35   : > { %p613_p0 = pneg %p612_p2  ;;  %p619_p6 = por %p618_p11, %p617_p4 }
  0x37   : > { %p620_p13 = pnand %p619_p6, %p613_p0 }
  0x39   : > { %623 = shalt.err (!%p620_p13)
}
  0x3a   : > { %s696_s6 = smov 512   ;;  %s697_s8 = smov 32  }
  0x3b   : > { %524 = dma.hbm_to_vmem [thread:$0]  (!%p793_p3), %s808_s16, 8192, %s810_s7, %s812_s17, %s696_s6, %s696_s6, %s697_s8  }
  0x3c   : > { %p1072_p5 = scmp.ne.s32.totalorder %s1068_s23, 0 }
  0x3d   : > { %s836_s14 = sand.u32 (!%p1072_p5), 1, %s684_s10   ;;  %p1073_p6 = scmp.ne.s32.totalorder (!%p1072_p5), %s1065_s20, 0 }
  0x3e   : > { %145 = sbr.rel (%p1072_p5) target bundleno = 126 (0x7e), region = 28  ;;  %s498_s19 = sshll.u32 (!%p1072_p5), %s836_s14, 9 }
  0x3f   : > { %s148_s24 = scalar_lea.sflag (!%p1072_p5), [#allocation3], %s836_s14  ;;  %s840_s25 = scalar_lea.vmem (!%p1072_p5), [#allocation2], %s498_s19 }
  0x43   : > { %667 = dma.done.wait (%p1073_p6), %s148_s24, 8192  }
  0x44   : > { %669 = vsyncadd (%p1073_p6), %s148_s24, 4294959104  ;;  %p1074_p13 = scmp.eq.s32.totalorder %s737_s13, 0 }
  0x46   : > { %671 = dma.done.wait (%p1074_p13), [#allocation6], 64   ;;  %p1075_p3 = pmov %p1074_p13 }
  0x47   : > { %v244_v0 = vlaneseq  ;;  %v178_v6 = vld [vmem:[%s840_s25] sm:$0xff]  ;;  %v179_v7 = vld [vmem:[%s840_s25 + $0x8] sm:$0xff]  ;;  %v180_v8 = vld [vmem:[%s840_s25 + $0x10] sm:$0xff]  ;;  %s500_s20 = sshll.u32 %s836_s14, 7  ;;  %s508_s28 = sshll.u32 %s737_s13, 11 }
  0x48   : > { %673 = vsyncadd (%p1075_p3), [#allocation6], 4294967232  ;;  %v181_v9 = vld [vmem:[%s840_s25 + $0x18] sm:$0xff]  ;;  %v242_v10 = vld [vmem:[#allocation5] sm:$0xf]  ;;  %s911_s23 = scalar_lea.vmem [#allocation7], %s500_s20  ;;  %s1010_s26 = scalar_lea.hbm %s1059_s2, %s508_s28 }
  0x49   : > { %v245_v1 = vshrl.u32 %v244_v0, 7  ;;  %v182_v11 = vld [vmem:[%s840_s25 + $0x20] sm:$0xff]  ;;  %v183_v16 = vld [vmem:[%s840_s25 + $0x28] sm:$0xff]  ;;  %v184_v17 = vld [vmem:[%s840_s25 + $0x30] sm:$0xff]  ;;  %s406_s7 = sshll.u32 %s911_s23, 4  ;;  %s393_s29 = scalar_lea.sflag [#allocation4], %s836_s14  ;;  %s1012_s7 = int_to_ptr.vmem [resolvable:$true] %s406_s7 }
  0x4a   : > { %v185_v18 = vld [vmem:[%s840_s25 + $0x38] sm:$0xff]  ;;  %v186_v19 = vld [vmem:[%s840_s25 + $0x40] sm:$0xff]  ;;  %v187_v20 = vld [vmem:[%s840_s25 + $0x48] sm:$0xff]  ;;  %s624_s30 = scalar_lea.vmem %s1012_s7, 2048  ;;  %p1076_p1 = scmp.ne.s32.totalorder %s1066_s21, 0 }
  0x4b   : > { %v246_v2 = vsub.s32 0, %v245_v1  ;;  %v250_v3 = vsub.s32 1, %v245_v1  ;;  %v254_v4 = vsub.s32 2, %v245_v1  ;;  %v258_v5 = vsub.s32 3, %v245_v1  ;;  %v188_v21 = vld [vmem:[%s840_s25 + $0x50] sm:$0xff]  ;;  %v189_v26 = vld [vmem:[%s840_s25 + $0x58] sm:$0xff]  ;;  %p625_p12 = scmp.ne.s32.totalorder %s1012_s7, %s624_s30 }
  0x4c   : > { %v190_v27 = vld [vmem:[%s840_s25 + $0x60] sm:$0xff]  ;;  %v191_v28 = vld [vmem:[%s840_s25 + $0x68] sm:$0xff]  ;;  %v192_v33 = vld [vmem:[%s840_s25 + $0x70] sm:$0xff]  ;;  %s698_s13 = smov [#allocation7]  }
  0x4d   : > { %v855_v12 = vrot.slane %v242_v10, %v246_v2  ;;  %v857_v13 = vrot.slane %v242_v10, %v250_v3  ;;  %v859_v14 = vrot.slane %v242_v10, %v254_v4  ;;  %v861_v15 = vrot.slane %v242_v10, %v258_v5  ;;  %v193_v34 = vld [vmem:[%s840_s25 + $0x78] sm:$0xff]  ;;  %v194_v39 = vld [vmem:[%s840_s25 + $0x80] sm:$0xff]  ;;  %v195_v40 = vld [vmem:[%s840_s25 + $0x88] sm:$0xff]  ;;  %p626_p7 = pnand %p625_p12, %p1076_p1  ;;  %s628_s27 = sshll.u32 %s698_s13, 4  ;;  %s629_s27 = int_to_ptr.vmem [resolvable:$false] %s628_s27 }
  0x4e   : > { %v196_v45 = vld [vmem:[%s840_s25 + $0x90] sm:$0xff]  ;;  %v197_v46 = vld [vmem:[%s840_s25 + $0x98] sm:$0xff]  ;;  %v198_v51 = vld [vmem:[%s840_s25 + $0xa0] sm:$0xff]  ;;  %s630_s3 = scalar_lea.vmem %s629_s27, 4096  ;;  %p631_p9 = scmp.lt.s32.totalorder %s1012_s7, %s629_s27 }
  0x4f   : > { %v264_v22 = vmul.f32 %v855_v12, %v178_v6  ;;  %v265_v23 = vmul.f32 %v857_v13, %v179_v7  ;;  %v266_v24 = vmul.f32 %v859_v14, %v180_v8  ;;  %v267_v25 = vmul.f32 %v861_v15, %v181_v9  ;;  %v199_v56 = vld [vmem:[%s840_s25 + $0xa8] sm:$0xff]  ;;  %v200_v57 = vld [vmem:[%s840_s25 + $0xb0] sm:$0xff]  ;;  %v201_v58 = vld [vmem:[%s840_s25 + $0xb8] sm:$0xff]  ;;  %p627_p8 = pneg %p626_p7  ;;  %p632_p10 = scmp.lt.s32.totalorder %s630_s3, %s624_s30 }
  0x50   : > { %v268_v29 = vmul.f32 %v855_v12, %v182_v11  ;;  %v269_v30 = vmul.f32 %v857_v13, %v183_v16  ;;  %v270_v31 = vmul.f32 %v859_v14, %v184_v17  ;;  %v271_v32 = vmul.f32 %v861_v15, %v185_v18  ;;  %v202_v63 = vld [vmem:[%s840_s25 + $0xc0] sm:$0xff]  ;;  %v203_v0 = vld [vmem:[%s840_s25 + $0xc8] sm:$0xff]  ;;  %v204_v5 = vld [vmem:[%s840_s25 + $0xd0] sm:$0xff] }
  0x51   : > { %v328_v35 = vadd.f32 %v265_v23, %v264_v22  ;;  %v272_v36 = vmul.f32 %v855_v12, %v186_v19  ;;  %v273_v37 = vmul.f32 %v857_v13, %v187_v20  ;;  %v274_v38 = vmul.f32 %v859_v14, %v188_v21  ;;  %v205_v6 = vld [vmem:[%s840_s25 + $0xd8] sm:$0xff]  ;;  %v206_v7 = vld [vmem:[%s840_s25 + $0xe0] sm:$0xff]  ;;  %v207_v16 = vld [vmem:[%s840_s25 + $0xe8] sm:$0xff]  ;;  %p633_p2 = por %p632_p10, %p631_p9 }
  0x52   : > { %v329_v41 = vadd.f32 %v269_v30, %v268_v29  ;;  %v275_v42 = vmul.f32 %v861_v15, %v189_v26  ;;  %v276_v43 = vmul.f32 %v855_v12, %v190_v27  ;;  %v277_v44 = vmul.f32 %v857_v13, %v191_v28  ;;  %v208_v17 = vld [vmem:[%s840_s25 + $0xf0] sm:$0xff]  ;;  %v209_v22 = vld [vmem:[%s840_s25 + $0xf8] sm:$0xff]  ;;  %v210_v23 = vld [vmem:[%s840_s25 + $0x100] sm:$0xff] }
  0x53   : > { %v344_v47 = vadd.f32 %v328_v35, %v266_v24  ;;  %v330_v48 = vadd.f32 %v273_v37, %v272_v36  ;;  %v278_v49 = vmul.f32 %v859_v14, %v192_v33  ;;  %v279_v50 = vmul.f32 %v861_v15, %v193_v34  ;;  %v211_v24 = vld [vmem:[%s840_s25 + $0x108] sm:$0xff]  ;;  %v212_v29 = vld [vmem:[%s840_s25 + $0x110] sm:$0xff]  ;;  %v213_v30 = vld [vmem:[%s840_s25 + $0x118] sm:$0xff]  ;;  %p634_p0 = pnand %p633_p2, %p627_p8 }
  0x54   : > { %v345_v52 = vadd.f32 %v329_v41, %v270_v31  ;;  %v331_v53 = vadd.f32 %v277_v44, %v276_v43  ;;  %v280_v54 = vmul.f32 %v855_v12, %v194_v39  ;;  %v281_v55 = vmul.f32 %v857_v13, %v195_v40  ;;  %v214_v35 = vld [vmem:[%s840_s25 + $0x120] sm:$0xff]  ;;  %v215_v36 = vld [vmem:[%s840_s25 + $0x128] sm:$0xff]  ;;  %v216_v41 = vld [vmem:[%s840_s25 + $0x130] sm:$0xff] }
  0x55   : > { %v360_v59 = vadd.f32 %v344_v47, %v267_v25  ;;  %v346_v60 = vadd.f32 %v330_v48, %v274_v38  ;;  %v282_v61 = vmul.f32 %v859_v14, %v196_v45  ;;  %v283_v62 = vmul.f32 %v861_v15, %v197_v46  ;;  %v218_v47 = vld [vmem:[%s840_s25 + $0x140] sm:$0xff]  ;;  %v219_v48 = vld [vmem:[%s840_s25 + $0x148] sm:$0xff] }
  0x56   : > { %v361_v1 = vadd.f32 %v345_v52, %v271_v32  ;;  %v347_v2 = vadd.f32 %v331_v53, %v278_v49  ;;  %v332_v3 = vadd.f32 %v281_v55, %v280_v54  ;;  %v284_v4 = vmul.f32 %v855_v12, %v198_v51  ;;  %v220_v53 = vld [vmem:[%s840_s25 + $0x150] sm:$0xff]  ;;  %v221_v54 = vld [vmem:[%s840_s25 + $0x158] sm:$0xff]  ;;  %v222_v55 = vld [vmem:[%s840_s25 + $0x160] sm:$0xff] }
  0x57   : > { %376 = vst [vmem:[%s911_s23] sm:$0xff] %v360_v59  ;;  %v362_v8 = vadd.f32 %v346_v60, %v275_v42  ;;  %v285_v9 = vmul.f32 %v857_v13, %v199_v56  ;;  %v286_v10 = vmul.f32 %v859_v14, %v200_v57  ;;  %v287_v11 = vmul.f32 %v861_v15, %v201_v58  ;;  %v217_v42 = vld [vmem:[%s840_s25 + $0x138] sm:$0xff]  ;;  %v223_v60 = vld [vmem:[%s840_s25 + $0x168] sm:$0xff] }
  0x58   : > { %377 = vst [vmem:[%s911_s23 + $0x8] sm:$0xff] %v361_v1  ;;  %v363_v18 = vadd.f32 %v347_v2, %v279_v50  ;;  %v348_v19 = vadd.f32 %v332_v3, %v282_v61  ;;  %v288_v20 = vmul.f32 %v855_v12, %v202_v63  ;;  %v289_v21 = vmul.f32 %v857_v13, %v203_v0  ;;  %v224_v61 = vld [vmem:[%s840_s25 + $0x170] sm:$0xff]  ;;  %v225_v2 = vld [vmem:[%s840_s25 + $0x178] sm:$0xff]  ;;  %v226_v3 = vld [vmem:[%s840_s25 + $0x180] sm:$0xff] }
  0x59   : > { %378 = vst [vmem:[%s911_s23 + $0x10] sm:$0xff] %v362_v8  ;;  %v333_v25 = vadd.f32 %v285_v9, %v284_v4  ;;  %v290_v26 = vmul.f32 %v859_v14, %v204_v5  ;;  %v291_v27 = vmul.f32 %v861_v15, %v205_v6  ;;  %v292_v28 = vmul.f32 %v855_v12, %v206_v7  ;;  %v227_v4 = vld [vmem:[%s840_s25 + $0x188] sm:$0xff]  ;;  %v228_v9 = vld [vmem:[%s840_s25 + $0x190] sm:$0xff] }
  0x5a   : > { %379 = vst [vmem:[%s911_s23 + $0x18] sm:$0xff] %v363_v18  ;;  %v364_v31 = vadd.f32 %v348_v19, %v283_v62  ;;  %v334_v32 = vadd.f32 %v289_v21, %v288_v20  ;;  %v293_v33 = vmul.f32 %v857_v13, %v207_v16  ;;  %v294_v34 = vmul.f32 %v859_v14, %v208_v17  ;;  %v229_v18 = vld [vmem:[%s840_s25 + $0x198] sm:$0xff]  ;;  %v230_v19 = vld [vmem:[%s840_s25 + $0x1a0] sm:$0xff]  ;;  %v231_v20 = vld [vmem:[%s840_s25 + $0x1a8] sm:$0xff] }
  0x5b   : > { %v349_v37 = vadd.f32 %v333_v25, %v286_v10  ;;  %v295_v38 = vmul.f32 %v861_v15, %v209_v22  ;;  %v296_v39 = vmul.f32 %v855_v12, %v210_v23  ;;  %v297_v40 = vmul.f32 %v857_v13, %v211_v24  ;;  %v232_v25 = vld [vmem:[%s840_s25 + $0x1b0] sm:$0xff] }
  0x5c   : > { %380 = vst [vmem:[%s911_s23 + $0x20] sm:$0xff] %v364_v31  ;;  %v350_v43 = vadd.f32 %v334_v32, %v290_v26  ;;  %v335_v44 = vadd.f32 %v293_v33, %v292_v28  ;;  %v298_v45 = vmul.f32 %v859_v14, %v212_v29  ;;  %v299_v46 = vmul.f32 %v861_v15, %v213_v30  ;;  %v233_v26 = vld [vmem:[%s840_s25 + $0x1b8] sm:$0xff]  ;;  %v234_v31 = vld [vmem:[%s840_s25 + $0x1c0] sm:$0xff]  ;;  %v235_v32 = vld [vmem:[%s840_s25 + $0x1c8] sm:$0xff] }
  0x5d   : > { %v365_v49 = vadd.f32 %v349_v37, %v287_v11  ;;  %v336_v50 = vadd.f32 %v297_v40, %v296_v39  ;;  %v300_v51 = vmul.f32 %v855_v12, %v214_v35  ;;  %v301_v52 = vmul.f32 %v857_v13, %v215_v36  ;;  %v236_v37 = vld [vmem:[%s840_s25 + $0x1d0] sm:$0xff]  ;;  %v238_v39 = vld [vmem:[%s840_s25 + $0x1e0] sm:$0xff] }
  0x5e   : > { %v366_v56 = vadd.f32 %v350_v43, %v291_v27  ;;  %v351_v57 = vadd.f32 %v335_v44, %v294_v34  ;;  %v302_v58 = vmul.f32 %v859_v14, %v216_v41  ;;  %v303_v59 = vmul.f32 %v861_v15, %v217_v42  ;;  %v239_v44 = vld [vmem:[%s840_s25 + $0x1e8] sm:$0xff] }
  0x5f   : > { %381 = vst [vmem:[%s911_s23 + $0x28] sm:$0xff] %v365_v49  ;;  %v352_v62 = vadd.f32 %v336_v50, %v298_v45  ;;  %v337_v63 = vadd.f32 %v301_v52, %v300_v51  ;;  %v304_v0 = vmul.f32 %v855_v12, %v218_v47  ;;  %v305_v1 = vmul.f32 %v857_v13, %v219_v48  ;;  %v240_v49 = vld [vmem:[%s840_s25 + $0x1f0] sm:$0xff] }
  0x60   : > { %382 = vst [vmem:[%s911_s23 + $0x30] sm:$0xff] %v366_v56  ;;  %v367_v5 = vadd.f32 %v351_v57, %v295_v38  ;;  %v306_v6 = vmul.f32 %v859_v14, %v220_v53  ;;  %v307_v7 = vmul.f32 %v861_v15, %v221_v54  ;;  %v308_v8 = vmul.f32 %v855_v12, %v222_v55  ;;  %v237_v38 = vld [vmem:[%s840_s25 + $0x1d8] sm:$0xff] }
  0x61   : > { %v368_v10 = vadd.f32 %v352_v62, %v299_v46  ;;  %v353_v11 = vadd.f32 %v337_v63, %v302_v58  ;;  %v338_v16 = vadd.f32 %v305_v1, %v304_v0  ;;  %v309_v17 = vmul.f32 %v857_v13, %v223_v60  ;;  %v241_v53 = vld [vmem:[%s840_s25 + $0x1f8] sm:$0xff] }
  0x62   : > { %383 = vst [vmem:[%s911_s23 + $0x38] sm:$0xff] %v367_v5  ;;  %v310_v21 = vmul.f32 %v859_v14, %v224_v61  ;;  %v311_v22 = vmul.f32 %v861_v15, %v225_v2  ;;  %v312_v23 = vmul.f32 %v855_v12, %v226_v3  ;;  %v313_v24 = vmul.f32 %v857_v13, %v227_v4 }
  0x63   : > { %384 = vst [vmem:[%s911_s23 + $0x40] sm:$0xff] %v368_v10  ;;  %v369_v27 = vadd.f32 %v353_v11, %v303_v59  ;;  %v354_v28 = vadd.f32 %v338_v16, %v306_v6  ;;  %v339_v29 = vadd.f32 %v309_v17, %v308_v8  ;;  %v314_v30 = vmul.f32 %v859_v14, %v228_v9 }
  0x64   : > { %v315_v33 = vmul.f32 %v861_v15, %v229_v18  ;;  %v340_v34 = vadd.f32 %v313_v24, %v312_v23  ;;  %v316_v35 = vmul.f32 %v855_v12, %v230_v19  ;;  %v317_v36 = vmul.f32 %v857_v13, %v231_v20 }
  0x65   : > { %385 = vst [vmem:[%s911_s23 + $0x48] sm:$0xff] %v369_v27  ;;  %v370_v40 = vadd.f32 %v354_v28, %v307_v7  ;;  %v355_v41 = vadd.f32 %v339_v29, %v310_v21  ;;  %v318_v42 = vmul.f32 %v859_v14, %v232_v25  ;;  %v319_v43 = vmul.f32 %v861_v15, %v233_v26 }
  0x66   : > { %v356_v45 = vadd.f32 %v340_v34, %v314_v30  ;;  %v341_v46 = vadd.f32 %v317_v36, %v316_v35  ;;  %v320_v47 = vmul.f32 %v855_v12, %v234_v31  ;;  %v321_v48 = vmul.f32 %v857_v13, %v235_v32 }
  0x67   : > { %386 = vst [vmem:[%s911_s23 + $0x50] sm:$0xff] %v370_v40  ;;  %v371_v50 = vadd.f32 %v355_v41, %v311_v22  ;;  %v322_v51 = vmul.f32 %v859_v14, %v236_v37  ;;  %v323_v52 = vmul.f32 %v861_v15, %v237_v38  ;;  %v324_v54 = vmul.f32 %v855_v12, %v238_v39 }
  0x68   : > { %v372_v55 = vadd.f32 %v356_v45, %v315_v33  ;;  %v357_v56 = vadd.f32 %v341_v46, %v318_v42  ;;  %v342_v57 = vadd.f32 %v321_v48, %v320_v47  ;;  %v325_v58 = vmul.f32 %v857_v13, %v239_v44 }
  0x69   : > { %387 = vst [vmem:[%s911_s23 + $0x58] sm:$0xff] %v371_v50  ;;  %v326_v59 = vmul.f32 %v859_v14, %v240_v49  ;;  %v327_v62 = vmul.f32 %v861_v15, %v241_v53 }
  0x6a   : > { %388 = vst [vmem:[%s911_s23 + $0x60] sm:$0xff] %v372_v55  ;;  %v373_v60 = vadd.f32 %v357_v56, %v319_v43  ;;  %v358_v61 = vadd.f32 %v342_v57, %v322_v51  ;;  %v343_v63 = vadd.f32 %v325_v58, %v324_v54 }
  0x6c   : > { %389 = vst [vmem:[%s911_s23 + $0x68] sm:$0xff] %v373_v60  ;;  %v374_v12 = vadd.f32 %v358_v61, %v323_v52  ;;  %v359_v0 = vadd.f32 %v343_v63, %v326_v59 }
  0x6e   : > { %390 = vst [vmem:[%s911_s23 + $0x70] sm:$0xff] %v374_v12  ;;  %v375_v13 = vadd.f32 %v359_v0, %v327_v62 }
  0x70   : > { %391 = vst [vmem:[%s911_s23 + $0x78] sm:$0xff] %v375_v13 }
  0x71   : > { %637 = shalt.err (!%p634_p0)
}
  0x72   : > { %s638_s4 = scalar_lea.hbm %s1010_s26, 2048  ;;  %s642_s8 = scalar_lea.hbm %s1059_s2, 4096 }
  0x73   : > { %p639_p4 = scmp.ne.s32.totalorder %s1010_s26, %s638_s4  ;;  %p643_p6 = scmp.lt.s32.totalorder %s1010_s26, %s1059_s2 }
  0x74   : > { %p644_p13 = scmp.lt.s32.totalorder %s642_s8, %s638_s4 }
  0x75   : > { %p640_p11 = pnand %p639_p4, %p1076_p1 }
  0x76   : > { %p645_p3 = por %p644_p13, %p643_p6 }
  0x77   : > { %p641_p5 = pneg %p640_p11 }
  0x79   : > { %p646_p12 = pnand %p645_p3, %p641_p5 }
  0x7b   : > { %649 = shalt.err (!%p646_p12)
}
  0x7c   : > { %s699_s25 = smov 128   ;;  %s700_s20 = smov 8  }
  0x7d   : > { %515 = dma.vmem_to_hbm [thread:$0]  (%p1076_p1), %s1012_s7, 2048, %s1010_s26, %s393_s29, %s699_s25, %s699_s25, %s700_s20  }
  0x7e PF: > { %s421_s23 = sand.u32 1, %s680_s9   ;;  %p1077_p7 = scmp.ne.s32.totalorder %s1067_s22, 0 }
  0x7f   : > { %p1078_p8 = scmp.ge.s32.totalorder %s692_s12, 2  ;;  %s422_s28 = scalar_lea.sflag [#allocation4], %s421_s23 }
  0x81   : > { %p526_p9 = pnand %p1078_p8, %p1077_p7 }
  0x83   : > { %p527_p10 = pneg %p526_p9 }
  0x85   : > { %675 = dma.done.wait (%p527_p10), %s422_s28, 2048  }
  0x86   : > { %677 = vsyncadd (%p527_p10), %s422_s28, 4294965248  ;;  %p16_p2 = scmp.ge.s32.totalorder %s741_s15, 4   ;;  %s1079_s9 = smov %s684_s10 }
  0x87   : > { %s1080_s10 = smov %s688_s11  ;;  %s1081_s11 = smov %s753_s18 }
  0x88   : > { %s1082_s12 = smov %s741_s15  ;;  %18 = sbr.rel (!%p16_p2) target bundleno = 6 (0x6), region = 77 }
  0x8d   :  { %427 = vsyncpa [#allocation3], 1 }
  0x8e   :  { %429 = vsyncpa [#allocation3 + $0x1], 1 }
  0x8f   :  { %430 = vsyncpa [#allocation6], 1 }
  0x90   :  { %431 = vsyncpa [#allocation4], 1 }
  0x91   :  { %433 = vsyncpa [#allocation4 + $0x1], 1 }

</bundles_post_ra>
